<compile_context>
chip_gen: v7x
topology: tpu7x:2x2x1
jax: 0.10.0
libtpu: 0.0.40
codegen_flags: <defaults>
</compile_context>

<pallas_src>
import jax
import jax.numpy as jnp
from jax.experimental import pallas as pl
from jax.experimental.pallas import tpu as pltpu

BN_EPS = 1e-5


def _round_up(x, m):
    return (x + m - 1) // m * m


def _pick_batch_tile(B):
    # Block second-minor dim must be divisible by 8 or equal the full dim.
    if B % 8 != 0:
        return B
    for cand in (512, 256, 128, 64, 32, 16, 8):
        if B % cand == 0:
            return cand
    return B


# ----------------------------- Pallas kernel ------------------------------- #

def fused_classifier_kernel(x_ref, w1_ref, b1_ref, w2_ref, b2_ref, o_ref):
    # x_ref : (1, TB, Cin_pad)    batch rows for spatial position s
    # w1_ref: (Cin_pad, Cout)     conv weight with BN scale folded in
    # b1_ref: (1, Cout)           conv bias with BN folded in
    # w2_ref: (1, Cout, NC_pad)   Linear weight slice for spatial position s
    # b2_ref: (1, NC_pad)         Linear bias (zero-padded to 128 lanes)
    # o_ref : (TB, NC_pad)        accumulator, resident across the s grid axis
    s = pl.program_id(1)

    @pl.when(s == 0)
    def _init():
        o_ref[...] = jnp.broadcast_to(b2_ref[...], o_ref.shape)

    # 1x1 conv (+ folded BN) + ReLU for this spatial position.
    y = jnp.dot(x_ref[0], w1_ref[...], preferred_element_type=jnp.float32)
    y = jnp.maximum(y + b1_ref[...], 0.0)                      # (TB, Cout)
    # Partial contribution of this spatial position to the final Linear.
    o_ref[...] += jnp.dot(y, w2_ref[0], preferred_element_type=jnp.float32)


# ------------------------------ Wrapper ------------------------------------ #

def fully_connected_classifier(x, params):
    """x: (B, 1000, H, W) float32 NCHW.  Requires num_class * H * W == 32."""
    B, Cin, H, W = x.shape
    HW = H * W
    conv_w = params["conv_w"]            # (Cout, Cin)
    conv_b = params["conv_b"]            # (Cout,)
    lin_w = params["lin_w"]              # (NC, Cout*H*W), torch flatten order (c,h,w)
    lin_b = params["lin_b"]              # (NC,)
    Cout = conv_w.shape[0]
    NC = lin_w.shape[0]

    Cin_pad = _round_up(Cin, 128)
    NC_pad = _round_up(NC, 128)
    TB = _pick_batch_tile(B)

    # ---- trace-time folding / layout prep (tiny shapes, fused by XLA) ----
    inv_std = 1.0 / jnp.sqrt(params["bn_var"] + BN_EPS)
    bn_scale = params["bn_gamma"] * inv_std
    bn_shift = params["bn_beta"] - params["bn_mean"] * bn_scale
    w1f = conv_w.T * bn_scale[None, :]                         # (Cin, Cout)
    w1f = jnp.pad(w1f, ((0, Cin_pad - Cin), (0, 0)))           # (Cin_pad, Cout)
    b1f = (conv_b * bn_scale + bn_shift).reshape(1, Cout)      # (1, Cout)

    # Permute Linear weight so it contracts in (spatial, channel) order:
    #   w2p[s, c, n] = lin_w[n, c*H*W + s]   (absorbs torch's .view(B,-1)).
    w2p = jnp.transpose(lin_w.reshape(NC, Cout, HW), (2, 1, 0))    # (HW, Cout, NC)
    w2p = jnp.pad(w2p, ((0, 0), (0, 0), (0, NC_pad - NC)))         # (HW, Cout, NC_pad)
    b2p = jnp.pad(lin_b, (0, NC_pad - NC)).reshape(1, NC_pad)      # (1, NC_pad)

    # NCHW -> (spatial, batch, channel); pad channels to a multiple of 128.
    x_r = jnp.transpose(x, (2, 3, 0, 1)).reshape(HW, B, Cin)
    x_r = jnp.pad(x_r, ((0, 0), (0, 0), (0, Cin_pad - Cin)))       # (HW, B, Cin_pad)

    flops = 2 * B * HW * Cin_pad * Cout + 2 * B * HW * Cout * NC_pad
    bytes_accessed = 4 * (HW * B * Cin_pad + Cin_pad * Cout
                          + HW * Cout * NC_pad + B * NC_pad)

    out_padded = pl.pallas_call(
        fused_classifier_kernel,
        out_shape=jax.ShapeDtypeStruct((B, NC_pad), jnp.float32),
        grid=(B // TB, HW),
        in_specs=[
            pl.BlockSpec((1, TB, Cin_pad), lambda b, s: (s, b, 0)),
            pl.BlockSpec((Cin_pad, Cout), lambda b, s: (0, 0)),
            pl.BlockSpec((1, Cout), lambda b, s: (0, 0)),
            pl.BlockSpec((1, Cout, NC_pad), lambda b, s: (s, 0, 0)),
            pl.BlockSpec((1, NC_pad), lambda b, s: (0, 0)),
        ],
        out_specs=pl.BlockSpec((TB, NC_pad), lambda b, s: (b, 0)),
        compiler_params=pltpu.CompilerParams(
            dimension_semantics=("parallel", "arbitrary")),
        cost_estimate=pl.CostEstimate(
            flops=flops, transcendentals=0, bytes_accessed=bytes_accessed),
    )(x_r, w1f, b1f, w2p, b2p)

    return out_padded[:, :NC]


# Pure-JAX reference (same semantics) for correctness check.
def reference(x, params):
    B, Cin, H, W = x.shape
    y = jnp.einsum("bchw,oc->bohw", x, params["conv_w"]) \
        + params["conv_b"][None, :, None, None]
    inv_std = 1.0 / jnp.sqrt(params["bn_var"] + BN_EPS)
    y = (y - params["bn_mean"][None, :, None, None]) * inv_std[None, :, None, None]
    y = y * params["bn_gamma"][None, :, None, None] + params["bn_beta"][None, :, None, None]
    y = jnp.maximum(y, 0.0)
    feat = y.reshape(B, -1)
    return feat @ params["lin_w"].T + params["lin_b"]


if __name__ == "__main__":
    # Shapes implied by the module: Cin = 1000 (hardwired), Linear in_features = 32,
    # so num_class * H * W must equal 32.  Pick num_class = 8, H = W = 2, B = 2.
    B, Cin, H, W = 2, 1000, 2, 2
    num_class = 8
    assert num_class * H * W == 32

    key = jax.random.PRNGKey(0)
    ks = jax.random.split(key, 9)
    params = {
        "conv_w": 0.02 * jax.random.normal(ks[0], (num_class, Cin), jnp.float32),
        "conv_b": 0.1 * jax.random.normal(ks[1], (num_class,), jnp.float32),
        "bn_gamma": 1.0 + 0.1 * jax.random.normal(ks[2], (num_class,), jnp.float32),
        "bn_beta": 0.1 * jax.random.normal(ks[3], (num_class,), jnp.float32),
        "bn_mean": 0.1 * jax.random.normal(ks[4], (num_class,), jnp.float32),
        "bn_var": jax.random.uniform(ks[5], (num_class,), jnp.float32, 0.5, 1.5),
        "lin_w": 0.1 * jax.random.normal(ks[6], (num_class, 32), jnp.float32),
        "lin_b": 0.1 * jax.random.normal(ks[7], (num_class,), jnp.float32),
    }
    x = jax.random.normal(ks[8], (B, Cin, H, W), jnp.float32)

    out = jax.block_until_ready(jax.jit(fully_connected_classifier)(x, params))
    ref = jax.block_until_ready(reference(x, params))

    assert out.shape == (B, num_class), out.shape
    assert jnp.allclose(out, ref, atol=1e-4, rtol=1e-4), (out, ref)
    print("KERNEL_OK")
</pallas_src>

<mosaic_0001>
module attributes {stable_mosaic.version = 11 : i64} {
  func.func @fused_classifier_kernel(%arg0: i32, %arg1: i32, %arg2: memref<1x2x1024xf32, #tpu.memory_space<vmem>>, %arg3: memref<1024x8xf32, #tpu.memory_space<vmem>>, %arg4: memref<1x8xf32, #tpu.memory_space<vmem>>, %arg5: memref<1x8x128xf32, #tpu.memory_space<vmem>>, %arg6: memref<1x128xf32, #tpu.memory_space<vmem>>, %arg7: memref<2x128xf32, #tpu.memory_space<vmem>>) attributes {dimension_semantics = [#tpu.dimension_semantics<parallel>, #tpu.dimension_semantics<arbitrary>], iteration_bounds = array<i64: 1, 4>, scalar_prefetch = 0 : i64, scratch_operands = 0 : i64, tpu.core_type = #tpu.core_type<tc>, window_params = [{transform_indices = @transform_0, window_bounds = array<i64: 1, 2, 1024>}, {pipeline_mode = #tpu.pipeline_mode<synchronous>, transform_indices = @transform_1, window_bounds = array<i64: 1024, 8>}, {pipeline_mode = #tpu.pipeline_mode<synchronous>, transform_indices = @transform_2, window_bounds = array<i64: 1, 8>}, {transform_indices = @transform_3, window_bounds = array<i64: 1, 8, 128>}, {pipeline_mode = #tpu.pipeline_mode<synchronous>, transform_indices = @transform_4, window_bounds = array<i64: 1, 128>}, {transform_indices = @transform_5, window_bounds = array<i64: 2, 128>}]} {
    %c0_i32 = arith.constant 0 : i32
    %0 = arith.cmpi eq, %arg1, %c0_i32 : i32
    %1 = arith.extui %0 : i1 to i32
    %c0_i32_0 = arith.constant 0 : i32
    %2 = arith.cmpi ne, %1, %c0_i32_0 : i32
    scf.if %2 {
      %c0_16 = arith.constant 0 : index
      %c0_17 = arith.constant 0 : index
      %18 = vector.load %arg6[%c0_16, %c0_17] : memref<1x128xf32, #tpu.memory_space<vmem>>, vector<1x128xf32>
      %19 = vector.shape_cast %18 : vector<1x128xf32> to vector<1x128xf32>
      %20 = vector.broadcast %19 : vector<1x128xf32> to vector<2x128xf32>
      %c0_18 = arith.constant 0 : index
      %c0_19 = arith.constant 0 : index
      %21 = vector.load %arg7[%c0_18, %c0_19] : memref<2x128xf32, #tpu.memory_space<vmem>>, vector<2x128xf32>
      tpu.vector_store %arg7[%c0_18, %c0_19], %20 {strides = array<i32>} : memref<2x128xf32, #tpu.memory_space<vmem>>, vector<2x128xf32>,
    } else {
    }
    %c0 = arith.constant 0 : index
    %c0_1 = arith.constant 0 : index
    %c0_2 = arith.constant 0 : index
    %3 = vector.load %arg2[%c0, %c0_1, %c0_2] : memref<1x2x1024xf32, #tpu.memory_space<vmem>>, vector<1x2x1024xf32>
    %4 = vector.shape_cast %3 : vector<1x2x1024xf32> to vector<2x1024xf32>
    %c0_3 = arith.constant 0 : index
    %c0_4 = arith.constant 0 : index
    %5 = vector.load %arg3[%c0_3, %c0_4] : memref<1024x8xf32, #tpu.memory_space<vmem>>, vector<1024x8xf32>
    %cst = arith.constant dense<0.000000e+00> : vector<2x8xf32>
    %6 = tpu.matmul %4, %5, %cst {dimension_numbers = #tpu.dot_dimension_numbers<[1], [0], [0], [1], [0, 0, 1, 1], [], []>} : vector<2x1024xf32>, vector<1024x8xf32>, vector<2x8xf32> -> vector<2x8xf32>
    %c0_5 = arith.constant 0 : index
    %c0_6 = arith.constant 0 : index
    %7 = vector.load %arg4[%c0_5, %c0_6] : memref<1x8xf32, #tpu.memory_space<vmem>>, vector<1x8xf32>
    %8 = vector.broadcast %7 : vector<1x8xf32> to vector<2x8xf32>
    %9 = arith.addf %6, %8 : vector<2x8xf32>
    %cst_7 = arith.constant 0.000000e+00 : f32
    %10 = vector.broadcast %cst_7 : f32 to vector<2x8xf32>
    %11 = arith.maximumf %9, %10 : vector<2x8xf32>
    %c0_8 = arith.constant 0 : index
    %c0_9 = arith.constant 0 : index
    %12 = vector.load %arg7[%c0_8, %c0_9] : memref<2x128xf32, #tpu.memory_space<vmem>>, vector<2x128xf32>
    %c0_10 = arith.constant 0 : index
    %c0_11 = arith.constant 0 : index
    %c0_12 = arith.constant 0 : index
    %13 = vector.load %arg5[%c0_10, %c0_11, %c0_12] : memref<1x8x128xf32, #tpu.memory_space<vmem>>, vector<1x8x128xf32>
    %14 = vector.shape_cast %13 : vector<1x8x128xf32> to vector<8x128xf32>
    %cst_13 = arith.constant dense<0.000000e+00> : vector<2x128xf32>
    %15 = tpu.matmul %11, %14, %cst_13 {dimension_numbers = #tpu.dot_dimension_numbers<[1], [0], [0], [1], [0, 0, 1, 1], [], []>} : vector<2x8xf32>, vector<8x128xf32>, vector<2x128xf32> -> vector<2x128xf32>
    %16 = arith.addf %12, %15 : vector<2x128xf32>
    %c0_14 = arith.constant 0 : index
    %c0_15 = arith.constant 0 : index
    %17 = vector.load %arg7[%c0_14, %c0_15] : memref<2x128xf32, #tpu.memory_space<vmem>>, vector<2x128xf32>
    tpu.vector_store %arg7[%c0_14, %c0_15], %16 {strides = array<i32>} : memref<2x128xf32, #tpu.memory_space<vmem>>, vector<2x128xf32>,
    return
  }
  func.func @transform_0(%arg0: i32, %arg1: i32) -> (i32, i32, i32) {
    %c0_i32 = arith.constant 0 : i32
    %c0_i32_0 = arith.constant 0 : i32
    return %arg1, %arg0, %c0_i32 : i32, i32, i32
  }
  func.func @transform_1(%arg0: i32, %arg1: i32) -> (i32, i32) {
    %c0_i32 = arith.constant 0 : i32
    %c0_i32_0 = arith.constant 0 : i32
    %c0_i32_1 = arith.constant 0 : i32
    return %c0_i32, %c0_i32_0 : i32, i32
  }
  func.func @transform_2(%arg0: i32, %arg1: i32) -> (i32, i32) {
    %c0_i32 = arith.constant 0 : i32
    %c0_i32_0 = arith.constant 0 : i32
    %c0_i32_1 = arith.constant 0 : i32
    return %c0_i32, %c0_i32_0 : i32, i32
  }
  func.func @transform_3(%arg0: i32, %arg1: i32) -> (i32, i32, i32) {
    %c0_i32 = arith.constant 0 : i32
    %c0_i32_0 = arith.constant 0 : i32
    %c0_i32_1 = arith.constant 0 : i32
    return %arg1, %c0_i32, %c0_i32_0 : i32, i32, i32
  }
  func.func @transform_4(%arg0: i32, %arg1: i32) -> (i32, i32) {
    %c0_i32 = arith.constant 0 : i32
    %c0_i32_0 = arith.constant 0 : i32
    %c0_i32_1 = arith.constant 0 : i32
    return %c0_i32, %c0_i32_0 : i32, i32
  }
  func.func @transform_5(%arg0: i32, %arg1: i32) -> (i32, i32) {
    %c0_i32 = arith.constant 0 : i32
    %c0_i32_0 = arith.constant 0 : i32
    return %arg0, %c0_i32 : i32, i32
  }
}

</mosaic_0001>

<bundles_post_ra>
// kernel: fully_connected_classifier.1
= control target key start
LH: loop header
LB: loop body
LE: loop exit
PB: predicated region body
PF: predicated region fallthrough
CT: control target
= control target key end

     0   :  { %10 = vsyncpa [#allocation3], 0  ;;  %s1306_s18 = smov 0   ;;  %s1308_s19 = smov 0   ;;  %s1776_s0 = inlined_call_operand.vmem [shape: f32[4,2,1024], index: 0, kind: input, shape index: {}]   ;;  %s1777_s1 = inlined_call_operand.vmem [shape: f32[1024,8], index: 1, kind: input, shape index: {}]   ;;  %s1778_s2 = inlined_call_operand.vmem [shape: f32[1,8], index: 2, kind: input, shape index: {}]   ;;  %s1779_s3 = inlined_call_operand.vmem [shape: f32[4,8,128], index: 3, kind: input, shape index: {}]   ;;  %s1780_s4 = inlined_call_operand.vmem [shape: f32[1,128], index: 4, kind: input, shape index: {}]   ;;  %s1781_s5 = inlined_call_operand.hbm [shape: f32[2,128], index: 5, kind: output, shape index: {}]  }
   0x1   :  { %s1310_s20 = smov 0  }
   0x2 LB: > { %s891_s21 = sadd.s32 4294967295, %s1270_s20   ;;  %s25_s22 = sadd.s32 1, %s1266_s19  ;;  %s1270_s20 = sphi %s1310_s20, %s16_s20   ;;  %s1266_s19 = sphi %s1308_s19, %s1784_s19   ;;  %s1262_s18 = sphi %s1306_s18, %s1783_s18  }
   0x3   : > { %p26_p0 = scmp.ge.s32.totalorder %s25_s22, 4  ;;  %p894_p1 = scmp.ge.s32.totalorder %s1270_s20, 1 }
   0x4   : > { %p215_p2 = scmp.lt.s32.totalorder %s1270_s20, 5 }
   0x5   : > { %s1786_s22 = smov (%p26_p0, %s25_s22), 0 }
   0x6   : > { %p216_p3 = pnand %p894_p1, %p215_p2 }
   0x7   : > { %p246_p4 = scmp.lt.s32.totalorder (!%p216_p3), %s1262_s18, 3  ;;  %p898_p5 = scmp.ne.s32.totalorder (!%p216_p3), %s1262_s18, 0 }
   0x8   : > { %219 = sbr.rel (%p216_p3) target bundleno = 540 (0x21c), region = 40 }
   0xf   : > { %s247_s23 = scalar_select %p246_p4, %s1262_s18, 3 }
  0x10   : > { %262 = sbr.rel (%p898_p5) target bundleno = 23 (0x17), region = 44  ;;  %v899_v0 = vld [vmem:[%s1780_s4] ss:$0 sm:$0xff] (!%p898_p5) }
  0x11   : > { %s906_s24 = sshll.u32 %s247_s23, 4  ;;  %s897_s25 = sshll.u32 %s247_s23, 3  ;;  %270 = vst [vmem:[#allocation2] sm:$0x3] (!%p898_p5), %v899_v0 }
  0x12   : > { %s1328_s28 = scalar_lea.vmem %s1776_s0, %s906_s24  ;;  %s1333_s6 = scalar_lea.vmem %s1779_s3, %s897_s25 }
  0x17 PF: > { %v289_v1 = vld [vmem:[%s1777_s1 + $0x80] sm:$0xff]  ;;  %v290_v2 = vld [vmem:[%s1777_s1 + $0x88] sm:$0xff]  ;;  %v291_v12 = vld [vmem:[%s1777_s1 + $0x90] sm:$0xff]  ;;  %v1272_v48 = vmov 1983009808   ;;  %v414_v50 = vlaneseq  ;;  %vm1274_vm0 = vmmov 0  }
  0x18   : > { %v273_v3 = vld [vmem:[%s1777_s1] sm:$0xff]  ;;  %v1054_v4 = vpack.c.bf16 %v290_v2, %v289_v1  ;;  %v274_v5 = vld [vmem:[%s1777_s1 + $0x8] sm:$0xff]  ;;  %v292_v14 = vld [vmem:[%s1777_s1 + $0x98] sm:$0xff]  ;;  %v412_v49 = vunpack.c.l.s4 %v1272_v48  ;;  %vm735_vm1 = vcmask 64512   ;;  %p1741_p6 = scmp.eq.s32.totalorder %s891_s21, 3 }
  0x19   : > { %v321_v6 = vld [vmem:[%s1777_s1 + $0x180] sm:$0xff]  ;;  %v322_v7 = vld [vmem:[%s1777_s1 + $0x188] sm:$0xff]  ;;  %v1056_v8 = vpack.c.bf16 %v274_v5, %v273_v3  ;;  %v275_v15 = vld [vmem:[%s1777_s1 + $0x10] sm:$0xff]  ;;  %v1058_v17 = vpack.c.bf16 %v292_v14, %v291_v12  ;;  %v415_v1 = vshrl.u32 %v414_v50, 7 }
  0x1a   : > { %v1086_v9 = vpack.c.bf16 %v322_v7, %v321_v6  ;;  %v305_v10 = vld [vmem:[%s1777_s1 + $0x100] sm:$0xff]  ;;  %v306_v11 = vld [vmem:[%s1777_s1 + $0x108] sm:$0xff]  ;;  %1055 = vmatprep.subr.bf16.mxu0 %v1054_v4  ;;  %v276_v16 = vld [vmem:[%s1777_s1 + $0x18] sm:$0xff]  ;;  %v413_v0 = vunpack.c.0.s8 %v412_v49 }
  0x1b   : > { %v1088_v13 = vpack.c.bf16 %v306_v11, %v305_v10  ;;  %1057 = vmatpush3.bf16.msra.mxu0 %v1056_v8  ;;  %v1060_v18 = vpack.c.bf16 %v276_v16, %v275_v15  ;;  %v323_v19 = vld [vmem:[%s1777_s1 + $0x190] sm:$0xff]  ;;  %v324_v20 = vld [vmem:[%s1777_s1 + $0x198] sm:$0xff]  ;;  %v293_v24 = vld [vmem:[%s1777_s1 + $0xa0] sm:$0xff] }
  0x1c   : > { %1087 = vmatprep.subr.bf16.mxu1 %v1086_v9  ;;  %v307_v21 = vld [vmem:[%s1777_s1 + $0x110] sm:$0xff]  ;;  %v1090_v22 = vpack.c.bf16 %v324_v20, %v323_v19  ;;  %v308_v23 = vld [vmem:[%s1777_s1 + $0x118] sm:$0xff]  ;;  %v294_v25 = vld [vmem:[%s1777_s1 + $0xa8] sm:$0xff]  ;;  %1059 = vmatprep.subr.bf16.mxu0 %v1058_v17  ;;  %v1488_v14 = vsub.s32 %v413_v0, %v415_v1 }
  0x1d   : > { %1089 = vmatpush3.bf16.msra.mxu1 %v1088_v13  ;;  %v1092_v26 = vpack.c.bf16 %v308_v23, %v307_v21  ;;  %v1062_v27 = vpack.c.bf16 %v294_v25, %v293_v24  ;;  %v277_v28 = vld [vmem:[%s1777_s1 + $0x20] sm:$0xff]  ;;  %v278_v29 = vld [vmem:[%s1777_s1 + $0x28] sm:$0xff]  ;;  %v295_v36 = vld [vmem:[%s1777_s1 + $0xb0] sm:$0xff] }
  0x1e   : > { %v325_v30 = vld [vmem:[%s1777_s1 + $0x1a0] sm:$0xff]  ;;  %1091 = vmatprep.subr.bf16.mxu1 %v1090_v22  ;;  %v326_v31 = vld [vmem:[%s1777_s1 + $0x1a8] sm:$0xff]  ;;  %v1064_v34 = vpack.c.bf16 %v278_v29, %v277_v28  ;;  %v296_v37 = vld [vmem:[%s1777_s1 + $0xb8] sm:$0xff] }
  0x1f   : > { %v309_v32 = vld [vmem:[%s1777_s1 + $0x120] sm:$0xff]  ;;  %v310_v33 = vld [vmem:[%s1777_s1 + $0x128] sm:$0xff]  ;;  %1061 = vmatpush3.bf16.msra.mxu0 %v1060_v18  ;;  %v1094_v35 = vpack.c.bf16 %v326_v31, %v325_v30  ;;  %v279_v38 = vld [vmem:[%s1777_s1 + $0x30] sm:$0xff]  ;;  %v1066_v40 = vpack.c.bf16 %v296_v37, %v295_v36 }
  0x20   : > { %1063 = vmatprep.subr.bf16.mxu0 %v1062_v27  ;;  %v1096_v39 = vpack.c.bf16 %v310_v33, %v309_v32  ;;  %v280_v41 = vld [vmem:[%s1777_s1 + $0x38] sm:$0xff]  ;;  %v327_v42 = vld [vmem:[%s1777_s1 + $0x1b0] sm:$0xff]  ;;  %v297_v47 = vld [vmem:[%s1777_s1 + $0xc0] sm:$0xff] }
  0x21   : > { %1093 = vmatpush3.bf16.msra.mxu1 %v1092_v26  ;;  %v328_v43 = vld [vmem:[%s1777_s1 + $0x1b8] sm:$0xff]  ;;  %v311_v45 = vld [vmem:[%s1777_s1 + $0x130] sm:$0xff]  ;;  %v298_v51 = vld [vmem:[%s1777_s1 + $0xc8] sm:$0xff]  ;;  %v1068_v52 = vpack.c.bf16 %v280_v41, %v279_v38 }
  0x22   : > { %1095 = vmatprep.subr.bf16.mxu1 %v1094_v35  ;;  %v1098_v44 = vpack.c.bf16 %v328_v43, %v327_v42  ;;  %v312_v46 = vld [vmem:[%s1777_s1 + $0x138] sm:$0xff]  ;;  %v329_v53 = vld [vmem:[%s1777_s1 + $0x1c0] sm:$0xff]  ;;  %v330_v54 = vld [vmem:[%s1777_s1 + $0x1c8] sm:$0xff]  ;;  %v1070_v56 = vpack.c.bf16 %v298_v51, %v297_v47 }
  0x23   : > { %1065 = vmatpush3.bf16.msra.mxu0 %v1064_v34  ;;  %v1100_v55 = vpack.c.bf16 %v312_v46, %v311_v45  ;;  %v281_v57 = vld [vmem:[%s1777_s1 + $0x40] sm:$0xff]  ;;  %v282_v58 = vld [vmem:[%s1777_s1 + $0x48] sm:$0xff]  ;;  %v1102_v60 = vpack.c.bf16 %v330_v54, %v329_v53  ;;  %v299_v62 = vld [vmem:[%s1777_s1 + $0xd0] sm:$0xff] }
  0x24   : > { %1067 = vmatprep.subr.bf16.mxu0 %v1066_v40  ;;  %v313_v59 = vld [vmem:[%s1777_s1 + $0x140] sm:$0xff]  ;;  %v314_v61 = vld [vmem:[%s1777_s1 + $0x148] sm:$0xff]  ;;  %v300_v63 = vld [vmem:[%s1777_s1 + $0xd8] sm:$0xff]  ;;  %v1072_v4 = vpack.c.bf16 %v282_v58, %v281_v57 }
  0x25   : > { %1097 = vmatpush3.bf16.msra.mxu1 %v1096_v39  ;;  %v331_v2 = vld [vmem:[%s1777_s1 + $0x1d0] sm:$0xff]  ;;  %v332_v3 = vld [vmem:[%s1777_s1 + $0x1d8] sm:$0xff]  ;;  %v1104_v5 = vpack.c.bf16 %v314_v61, %v313_v59  ;;  %v1074_v6 = vpack.c.bf16 %v300_v63, %v299_v62  ;;  %v301_v12 = vld [vmem:[%s1777_s1 + $0xe0] sm:$0xff] }
  0x26   : > { %1099 = vmatprep.subr.bf16.mxu1 %v1098_v44  ;;  %v283_v7 = vld [vmem:[%s1777_s1 + $0x50] sm:$0xff]  ;;  %v284_v8 = vld [vmem:[%s1777_s1 + $0x58] sm:$0xff]  ;;  %v1106_v10 = vpack.c.bf16 %v332_v3, %v331_v2  ;;  %v302_v13 = vld [vmem:[%s1777_s1 + $0xe8] sm:$0xff] }
  0x27   : > { %1069 = vmatpush3.bf16.msra.mxu0 %v1068_v52  ;;  %v315_v9 = vld [vmem:[%s1777_s1 + $0x150] sm:$0xff]  ;;  %v316_v11 = vld [vmem:[%s1777_s1 + $0x158] sm:$0xff]  ;;  %v333_v15 = vld [vmem:[%s1777_s1 + $0x1e0] sm:$0xff]  ;;  %v1076_v17 = vpack.c.bf16 %v284_v8, %v283_v7  ;;  %v1078_v20 = vpack.c.bf16 %v302_v13, %v301_v12 }
  0x28   : > { %1071 = vmatprep.subr.bf16.mxu0 %v1070_v56  ;;  %v334_v16 = vld [vmem:[%s1777_s1 + $0x1e8] sm:$0xff]  ;;  %v285_v18 = vld [vmem:[%s1777_s1 + $0x60] sm:$0xff]  ;;  %v1108_v19 = vpack.c.bf16 %v316_v11, %v315_v9  ;;  %v303_v26 = vld [vmem:[%s1777_s1 + $0xf0] sm:$0xff] }
  0x29   : > { %1101 = vmatpush3.bf16.msra.mxu1 %v1100_v55  ;;  %v286_v21 = vld [vmem:[%s1777_s1 + $0x68] sm:$0xff]  ;;  %v317_v22 = vld [vmem:[%s1777_s1 + $0x160] sm:$0xff]  ;;  %v1110_v24 = vpack.c.bf16 %v334_v16, %v333_v15  ;;  %v304_v27 = vld [vmem:[%s1777_s1 + $0xf8] sm:$0xff] }
  0x2a   : > { %1103 = vmatprep.subr.bf16.mxu1 %v1102_v60  ;;  %v271_v23 = vld [vmem:[%s1328_s28] sm:$0xff]  ;;  %v318_v25 = vld [vmem:[%s1777_s1 + $0x168] sm:$0xff]  ;;  %v335_v30 = vld [vmem:[%s1777_s1 + $0x1f0] sm:$0xff]  ;;  %v1080_v32 = vpack.c.bf16 %v286_v21, %v285_v18  ;;  %v1082_v36 = vpack.c.bf16 %v304_v27, %v303_v26 }
  0x2b   : > { %1073 = vmatpush3.bf16.msra.mxu0 %v1072_v4  ;;  %v417_v28 = vrot.slane %v271_v23, %v1488_v14  ;;  %v410_v29 = vcombine.high %v271_v23, %v271_v23  ;;  %v336_v31 = vld [vmem:[%s1777_s1 + $0x1f8] sm:$0xff]  ;;  %v1112_v35 = vpack.c.bf16 %v318_v25, %v317_v22  ;;  %v287_v37 = vld [vmem:[%s1777_s1 + $0x70] sm:$0xff]  ;;  %v353_v42 = vld [vmem:[%s1777_s1 + $0x280] sm:$0xff] }
  0x2c   : > { %1075 = vmatprep.subr.bf16.mxu0 %v1074_v6  ;;  %v288_v38 = vld [vmem:[%s1777_s1 + $0x78] sm:$0xff]  ;;  %v319_v39 = vld [vmem:[%s1777_s1 + $0x170] sm:$0xff]  ;;  %v1114_v40 = vpack.c.bf16 %v336_v31, %v335_v30  ;;  %v354_v43 = vld [vmem:[%s1777_s1 + $0x288] sm:$0xff] }
  0x2d   : > { %1105 = vmatpush3.bf16.msra.mxu1 %v1104_v5  ;;  %v425_v33 = vcombine.high %v417_v28, %v417_v28  ;;  %v424_v34 = vrot.slane %v410_v29, %v1488_v14  ;;  %v320_v41 = vld [vmem:[%s1777_s1 + $0x178] sm:$0xff]  ;;  %v385_v45 = vld [vmem:[%s1777_s1 + $0x380] sm:$0xff]  ;;  %v386_v46 = vld [vmem:[%s1777_s1 + $0x388] sm:$0xff]  ;;  %v1084_v47 = vpack.c.bf16 %v288_v38, %v287_v37  ;;  %v1118_v49 = vpack.c.bf16 %v354_v43, %v353_v42 }
  0x2e   : > { %1107 = vmatprep.subr.bf16.mxu1 %v1106_v10  ;;  %v1116_v48 = vpack.c.bf16 %v320_v41, %v319_v39  ;;  %v337_v50 = vld [vmem:[%s1777_s1 + $0x200] sm:$0xff]  ;;  %v338_v51 = vld [vmem:[%s1777_s1 + $0x208] sm:$0xff]  ;;  %v1150_v53 = vpack.c.bf16 %v386_v46, %v385_v45  ;;  %v355_v55 = vld [vmem:[%s1777_s1 + $0x290] sm:$0xff] }
  0x2f   : > { %1077 = vmatpush3.bf16.msra.mxu0 %v1076_v17  ;;  %516 = vmatprep.mubr.f32.mxu0 %v425_v33  ;;  %v426_v44 = vcombine.high %v424_v34, %v424_v34  ;;  %v369_v52 = vld [vmem:[%s1777_s1 + $0x300] sm:$0xff]  ;;  %v370_v54 = vld [vmem:[%s1777_s1 + $0x308] sm:$0xff]  ;;  %v356_v56 = vld [vmem:[%s1777_s1 + $0x298] sm:$0xff]  ;;  %v1120_v59 = vpack.c.bf16 %v338_v51, %v337_v50 }
  0x30   : > { %1079 = vmatprep.subr.bf16.mxu0 %v1078_v20  ;;  %v387_v57 = vld [vmem:[%s1777_s1 + $0x390] sm:$0xff]  ;;  %v388_v58 = vld [vmem:[%s1777_s1 + $0x398] sm:$0xff]  ;;  %v1152_v60 = vpack.c.bf16 %v370_v54, %v369_v52  ;;  %v1122_v61 = vpack.c.bf16 %v356_v56, %v355_v55  ;;  %v357_v3 = vld [vmem:[%s1777_s1 + $0x2a0] sm:$0xff] }
  0x31   : > { %1109 = vmatpush3.bf16.msra.mxu1 %v1108_v19  ;;  %586 = vmatprep.mubr.f32.mxu1 %v426_v44  ;;  %v339_v62 = vld [vmem:[%s1777_s1 + $0x210] sm:$0xff]  ;;  %v340_v63 = vld [vmem:[%s1777_s1 + $0x218] sm:$0xff]  ;;  %v1154_v1 = vpack.c.bf16 %v388_v58, %v387_v57  ;;  %v358_v4 = vld [vmem:[%s1777_s1 + $0x2a8] sm:$0xff] }
  0x32   : > { %1111 = vmatprep.subr.bf16.mxu1 %v1110_v24  ;;  %v371_v0 = vld [vmem:[%s1777_s1 + $0x310] sm:$0xff]  ;;  %v372_v2 = vld [vmem:[%s1777_s1 + $0x318] sm:$0xff]  ;;  %v389_v5 = vld [vmem:[%s1777_s1 + $0x3a0] sm:$0xff]  ;;  %v1124_v7 = vpack.c.bf16 %v340_v63, %v339_v62  ;;  %v1126_v9 = vpack.c.bf16 %v358_v4, %v357_v3 }
  0x33   : > { %1081 = vmatpush3.bf16.msra.mxu0 %v1080_v32  ;;  %v390_v6 = vld [vmem:[%s1777_s1 + $0x3a8] sm:$0xff]  ;;  %v1156_v8 = vpack.c.bf16 %v372_v2, %v371_v0  ;;  %v341_v10 = vld [vmem:[%s1777_s1 + $0x220] sm:$0xff]  ;;  %v359_v16 = vld [vmem:[%s1777_s1 + $0x2b0] sm:$0xff] }
  0x34   : > { %1083 = vmatprep.subr.bf16.mxu0 %v1082_v36  ;;  %v342_v11 = vld [vmem:[%s1777_s1 + $0x228] sm:$0xff]  ;;  %v373_v12 = vld [vmem:[%s1777_s1 + $0x320] sm:$0xff]  ;;  %v1158_v13 = vpack.c.bf16 %v390_v6, %v389_v5  ;;  %v360_v17 = vld [vmem:[%s1777_s1 + $0x2b8] sm:$0xff] }
  0x35   : > { %1113 = vmatpush3.bf16.msra.mxu1 %v1112_v35  ;;  %v374_v15 = vld [vmem:[%s1777_s1 + $0x328] sm:$0xff]  ;;  %v391_v18 = vld [vmem:[%s1777_s1 + $0x3b0] sm:$0xff]  ;;  %v392_v19 = vld [vmem:[%s1777_s1 + $0x3b8] sm:$0xff]  ;;  %v1128_v20 = vpack.c.bf16 %v342_v11, %v341_v10  ;;  %v1130_v22 = vpack.c.bf16 %v360_v17, %v359_v16 }
  0x36   : > { %1115 = vmatprep.subr.bf16.mxu1 %v1114_v40  ;;  %v1160_v21 = vpack.c.bf16 %v374_v15, %v373_v12  ;;  %v343_v23 = vld [vmem:[%s1777_s1 + $0x230] sm:$0xff]  ;;  %v344_v24 = vld [vmem:[%s1777_s1 + $0x238] sm:$0xff]  ;;  %v1162_v26 = vpack.c.bf16 %v392_v19, %v391_v18  ;;  %v362_v29 = vld [vmem:[%s1777_s1 + $0x2c8] sm:$0xff] }
  0x37   : > { %1085 = vmatpush3.bf16.msra.mxu0 %v1084_v47  ;;  %v375_v25 = vld [vmem:[%s1777_s1 + $0x330] sm:$0xff]  ;;  %v376_v27 = vld [vmem:[%s1777_s1 + $0x338] sm:$0xff]  ;;  %v393_v30 = vld [vmem:[%s1777_s1 + $0x3c0] sm:$0xff]  ;;  %v1132_v33 = vpack.c.bf16 %v344_v24, %v343_v23 }
  0x38   : > { %1119 = vmatprep.subr.bf16.mxu0 %v1118_v49  ;;  %v394_v31 = vld [vmem:[%s1777_s1 + $0x3c8] sm:$0xff]  ;;  %v1164_v36 = vpack.c.bf16 %v376_v27, %v375_v25  ;;  %v345_v38 = vld [vmem:[%s1777_s1 + $0x240] sm:$0xff]  ;;  %v363_v43 = vld [vmem:[%s1777_s1 + $0x2d0] sm:$0xff] }
  0x39   : > { %1117 = vmatpush3.bf16.msra.mxu1 %v1116_v48  ;;  %v272_v32 = vld [vmem:[%s1328_s28 + $0x8] sm:$0xff]  ;;  %v377_v40 = vld [vmem:[%s1777_s1 + $0x340] sm:$0xff]  ;;  %v1166_v41 = vpack.c.bf16 %v394_v31, %v393_v30  ;;  %v364_v44 = vld [vmem:[%s1777_s1 + $0x2d8] sm:$0xff] }
  0x3a   : > { %1151 = vmatprep.subr.bf16.mxu1 %v1150_v53  ;;  %517 = vmatmul.mubr.f32.vlgmr.msra.gmra.mrb[0].mxu0 %v417_v28  ;;  %v361_v28 = vld [vmem:[%s1777_s1 + $0x2c0] sm:$0xff]  ;;  %v427_v35 = vcombine.high %v272_v32, %v272_v32  ;;  %v346_v39 = vld [vmem:[%s1777_s1 + $0x248] sm:$0xff]  ;;  %v395_v47 = vld [vmem:[%s1777_s1 + $0x3d0] sm:$0xff]  ;;  %v1138_v52 = vpack.c.bf16 %v364_v44, %v363_v43 }
  0x3b   : > { %1121 = vmatpush3.bf16.msra.mxu0 %v1120_v59  ;;  %v1134_v37 = vpack.c.bf16 %v362_v29, %v361_v28  ;;  %v378_v42 = vld [vmem:[%s1777_s1 + $0x348] sm:$0xff]  ;;  %v396_v48 = vld [vmem:[%s1777_s1 + $0x3d8] sm:$0xff]  ;;  %v1136_v49 = vpack.c.bf16 %v346_v39, %v345_v38  ;;  %v379_v54 = vld [vmem:[%s1777_s1 + $0x350] sm:$0xff] }
  0x3c   : > { %587 = vmatmul.mubr.f32.vlgmr.msra.gmra.mrb[0].mxu1 %v424_v34  ;;  %1123 = vmatprep.subr.bf16.mxu0 %v1122_v61  ;;  %v1645_v34 = vrot.slane %v272_v32, %v1488_v14  ;;  %v441_v46 = vrot.slane %v427_v35, %v1488_v14  ;;  %v1168_v51 = vpack.c.bf16 %v378_v42, %v377_v40  ;;  %v347_v14 = vld [vmem:[%s1777_s1 + $0x250] sm:$0xff]  ;;  %v348_v53 = vld [vmem:[%s1777_s1 + $0x258] sm:$0xff]  ;;  %v365_v57 = vld [vmem:[%s1777_s1 + $0x2e0] sm:$0xff] }
  0x3d   : > { %1153 = vmatpush3.bf16.msra.mxu1 %v1152_v60  ;;  %v1170_v55 = vpack.c.bf16 %v396_v48, %v395_v47  ;;  %v380_v56 = vld [vmem:[%s1777_s1 + $0x358] sm:$0xff]  ;;  %v366_v58 = vld [vmem:[%s1777_s1 + $0x2e8] sm:$0xff]  ;;  %v397_v59 = vld [vmem:[%s1777_s1 + $0x3e0] sm:$0xff]  ;;  %v1140_v61 = vpack.c.bf16 %v348_v53, %v347_v14 }
  0x3e   : > { %1155 = vmatprep.subr.bf16.mxu1 %v1154_v1  ;;  %v442_v45 = vcombine.high %v1645_v34, %v1645_v34  ;;  %v443_v50 = vcombine.high %v441_v46, %v441_v46  ;;  %v398_v60 = vld [vmem:[%s1777_s1 + $0x3e8] sm:$0xff]  ;;  %v1172_v62 = vpack.c.bf16 %v380_v56, %v379_v54  ;;  %v1142_v63 = vpack.c.bf16 %v366_v58, %v365_v57  ;;  %v349_v0 = vld [vmem:[%s1777_s1 + $0x260] sm:$0xff]  ;;  %v367_v5 = vld [vmem:[%s1777_s1 + $0x2f0] sm:$0xff] }
  0x3f   : > { %1125 = vmatpush3.bf16.msra.mxu0 %v1124_v7  ;;  %v350_v1 = vld [vmem:[%s1777_s1 + $0x268] sm:$0xff]  ;;  %v381_v2 = vld [vmem:[%s1777_s1 + $0x360] sm:$0xff]  ;;  %v1174_v3 = vpack.c.bf16 %v398_v60, %v397_v59  ;;  %v368_v6 = vld [vmem:[%s1777_s1 + $0x2f8] sm:$0xff] }
  0x40   : > { %1127 = vmatprep.subr.bf16.mxu0 %v1126_v9  ;;  %656 = vmatprep.mubr.f32.mxu0 %v442_v45  ;;  %v382_v4 = vld [vmem:[%s1777_s1 + $0x368] sm:$0xff]  ;;  %v399_v7 = vld [vmem:[%s1777_s1 + $0x3f0] sm:$0xff]  ;;  %v1144_v9 = vpack.c.bf16 %v350_v1, %v349_v0  ;;  %v1146_v11 = vpack.c.bf16 %v368_v6, %v367_v5  ;;  %v384_v17 = vld [vmem:[%s1777_s1 + $0x378] sm:$0xff] }
  0x41   : > { %1157 = vmatpush3.bf16.msra.mxu1 %v1156_v8  ;;  %726 = vmatprep.mubr.f32.mxu1 %v443_v50  ;;  %v400_v8 = vld [vmem:[%s1777_s1 + $0x3f8] sm:$0xff]  ;;  %v1176_v10 = vpack.c.bf16 %v382_v4, %v381_v2  ;;  %v351_v12 = vld [vmem:[%s1777_s1 + $0x270] sm:$0xff]  ;;  %v900_v23 = vld [vmem:[%s1778_s2] ss:$0 sm:$0xff] }
  0x42   : > { %1159 = vmatprep.subr.bf16.mxu1 %v1158_v13  ;;  %v352_v13 = vld [vmem:[%s1777_s1 + $0x278] sm:$0xff]  ;;  %v1178_v15 = vpack.c.bf16 %v400_v8, %v399_v7  ;;  %v383_v16 = vld [vmem:[%s1777_s1 + $0x370] sm:$0xff]  ;;  %v733_v40 = vld [vmem:[#allocation2] sm:$0x3] }
  0x43   : > { %1129 = vmatpush3.bf16.msra.mxu0 %v1128_v20  ;;  %v1148_v18 = vpack.c.bf16 %v352_v13, %v351_v12  ;;  %v1180_v19 = vpack.c.bf16 %v384_v17, %v383_v16  ;;  %v1273_v20 = vmov 0.0  }
  0x44   : > { %1131 = vmatprep.subr.bf16.mxu0 %v1130_v22 }
  0x45   : > { %1161 = vmatpush3.bf16.msra.mxu1 %v1160_v21  ;;  %v734_v21 = vld [vmem:[%s1333_s6] sm:$0xff]  ;;  %s1275_s6 = smov [#allocation2]  }
  0x46   : > { %1163 = vmatprep.subr.bf16.mxu1 %v1162_v26  ;;  %s820_s17 = sshll.u32 %s1275_s6, 4  ;;  %s821_s17 = int_to_ptr.vmem [resolvable:$true] %s820_s17 }
  0x47   : > { %1133 = vmatpush3.bf16.msra.mxu0 %v1132_v33  ;;  %s1218_s23 = scalar_lea.vmem %s821_s17, 32  ;;  %p1225_p10 = scmp.lt.s32.totalorder %s821_s17, %s821_s17 }
  0x48   : > { %1135 = vmatprep.subr.bf16.mxu0 %v1134_v37  ;;  %p1219_p7 = scmp.ne.s32.totalorder %s821_s17, %s1218_s23  ;;  %p1226_p11 = scmp.lt.s32.totalorder %s1218_s23, %s1218_s23 }
  0x49   : > { %1165 = vmatpush3.bf16.msra.mxu1 %v1164_v36 }
  0x4a   : > { %1167 = vmatprep.subr.bf16.mxu1 %v1166_v41  ;;  %p1220_p8 = pnand %p1219_p7, %p1741_p6  ;;  %p1227_p12 = por %p1226_p11, %p1225_p10 }
  0x4b   : > { %1137 = vmatpush3.bf16.msra.mxu0 %v1136_v49 }
  0x4c   : > { %1139 = vmatprep.subr.bf16.mxu0 %v1138_v52  ;;  %p1221_p9 = pneg %p1220_p8 }
  0x4d   : > { %1169 = vmatpush3.bf16.msra.mxu1 %v1168_v51 }
  0x4e   : > { %1171 = vmatprep.subr.bf16.mxu1 %v1170_v55  ;;  %p1228_p13 = pnand %p1227_p12, %p1221_p9 }
  0x4f   : > { %1141 = vmatpush3.bf16.msra.mxu0 %v1140_v61 }
  0x50   : > { %1143 = vmatprep.subr.bf16.mxu0 %v1142_v63 }
  0x51   : > { %1173 = vmatpush3.bf16.msra.mxu1 %v1172_v62 }
  0x52   : > { %1175 = vmatprep.subr.bf16.mxu1 %v1174_v3 }
  0x53   : > { %1145 = vmatpush3.bf16.msra.mxu0 %v1144_v9 }
  0x54   : > { %1147 = vmatprep.subr.bf16.mxu0 %v1146_v11 }
  0x55   : > { %1177 = vmatpush3.bf16.msra.mxu1 %v1176_v10 }
  0x56   : > { %1179 = vmatprep.subr.bf16.mxu1 %v1178_v15 }
  0x57   : > { %1149 = vmatpush3.bf16.msra.mxu0 %v1148_v18 }
  0x58   : > { %1049 = vmatprep.subr.mxu0 %v1273_v20 }
  0x59   : > { %1181 = vmatpush3.bf16.msra.mxu1 %v1180_v19 }
  0x5a   : > { %657 = vmatmul.mubr.f32.vlgmr.msra.gmra.mrb[2].mxu0 %v1645_v34 }
  0x5b   : > { %1050 = vmatpush3.msra.mxu0 %v734_v21  ;;  %1051 = vmatprep.mubr.msk.f32.mxu0 %vm1274_vm0, %v1273_v20 }
  0x5c   : > { %727 = vmatmul.mubr.f32.vlgmr.msra.gmra.mrb[2].mxu1 %v441_v46 }
 0x10d   : > { %v939_v22 = vpop.f32.mrb[0].mxu0 }
 0x10e   : > { %v940_v24 = vpop.f32.mrb[1].mxu0 }
 0x10f   : > { %v974_v25 = vpop.f32.mrb[0].mxu1  ;;  %v941_v26 = vadd.f32 %v940_v24, %v939_v22 }
 0x110   : > { %v975_v27 = vpop.f32.mrb[1].mxu1 }
 0x111   : > { %v976_v28 = vadd.f32 %v975_v27, %v974_v25  ;;  %v519_v29 = vadd.f32 %v941_v26, %v900_v23 }
 0x113   : > { %v589_v30 = vadd.f32 %v976_v28, %v519_v29 }
 0x12d   : > { %v1009_v31 = vpop.f32.mrb[2].mxu0 }
 0x12e   : > { %v1010_v32 = vpop.f32.mrb[3].mxu0 }
 0x12f   : > { %v1044_v33 = vpop.f32.mrb[2].mxu1  ;;  %v1011_v34 = vadd.f32 %v1010_v32, %v1009_v31 }
 0x130   : > { %v1045_v35 = vpop.f32.mrb[3].mxu1 }
 0x131   : > { %v1046_v36 = vadd.f32 %v1045_v35, %v1044_v33  ;;  %v659_v37 = vadd.f32 %v1011_v34, %v589_v30 }
 0x133   : > { %v729_v38 = vadd.f32 %v1046_v36, %v659_v37 }
 0x135   : > { %v732_v39 = vmax.f32 %v729_v38, 0.0 }
 0x137   : > { %1052 = vmatmul.mubr.msk.f32.vlgmr.msra.gmra.mrb[4].mxu0 %vm735_vm1, %v732_v39 }
 0x20a   : > { %v805_v41 = vpop.f32.mrb[4].mxu0 }
 0x20b   : > { %v809_v42 = vadd.f32 %v805_v41, %v733_v40  ;;  %v1053_v43 = vpop.f32.mrb[5].mxu0 }
 0x20d   : > { %810 = vst [vmem:[#allocation2] sm:$0x3] %v809_v42 }
 0x20e   : > { %1231 = shalt.err (!%p1228_p13)
}
 0x20f   : > { %s1232_s25 = scalar_lea.hbm %s1781_s5, 32 }
 0x210   : > { %p1233_p0 = scmp.ne.s32.totalorder %s1781_s5, %s1232_s25  ;;  %p1238_p3 = scmp.lt.u32.totalorder %s1232_s25, %s1781_s5 }
 0x212   : > { %p1234_p1 = pnand %p1233_p0, %p1741_p6 }
 0x214   : > { %p1235_p2 = pneg %p1234_p1 }
 0x216   : > { %p1240_p4 = pnand %p1238_p3, %p1235_p2 }
 0x218   : > { %1243 = shalt.err (!%p1240_p4)
}
 0x219   : > { %1183 = dma.vmem_to_hbm [thread:$0]  (%p1741_p6), %s821_s17, 32, %s1781_s5, [#allocation3]  }
 0x21a   : > { %1257 = dma.done.wait (%p1741_p6), [#allocation3], 32  }
 0x21b   : > { %1259 = vsyncadd (%p1741_p6), [#allocation3], 4294967264 }
 0x21c PF: > { %s16_s20 = sadd.s32 1, %s1270_s20   ;;  %s1783_s18 = smov %s1266_s19 }
 0x21d   : > { %p13_p5 = scmp.ge.s32.totalorder %s16_s20, 6   ;;  %s1784_s19 = smov %s1786_s22 }
 0x21f   :  { %15 = sbr.rel (!%p13_p5) target bundleno = 2 (0x2), region = 75 }
 0x226   :  { %833 = vsyncpa [#allocation3], 1 }
 0x227   :  { %835 = vsyncpa [#allocation3 + $0x1], 1 }

</bundles_post_ra>
